<compile_context>
chip_gen: v7x
topology: tpu7x:2x2x1
jax: 0.10.0
libtpu: 0.0.40
codegen_flags: <defaults>
</compile_context>

<pallas_src>
from functools import partial

import numpy as np
import jax
import jax.numpy as jnp
from jax.experimental import pallas as pl
from jax.experimental.pallas import tpu as pltpu

# ---------------------------------------------------------------------------
# "match_costs" configuration (DiffusionDet defaults, fixed deterministically
# in-script — the matcher has no learned parameters).
CLS_WEIGHT = 2.0      # FocalLossCost(weight=2.0, alpha=0.25, gamma=2.0)
REG_WEIGHT = 5.0      # BBoxL1Cost(weight=5.0, box_format='xyxy', normalized)
IOU_WEIGHT = 2.0      # IoUCost(iou_mode='giou', weight=2.0)
ANGLE_WEIGHT = 1.0    # CrossEntropyLossCost(use_sigmoid=True) on angle_cls
CENTER_RADIUS = 2.5
CANDIDATE_TOPK = 5
FOCAL_ALPHA = 0.25
IOU_EPS = 1e-6

_BOX_OFF = 0          # rows/cols 0..3 : xyxy boxes (pixel coords)
_INV_OFF = 4          # gt cols 4..5   : (1/W, 1/H) broadcast scalars
_SEC_ALIGN = 8        # feature sections start on 8-sublane boundaries


def _round_up(x, m):
    return (x + m - 1) // m * m


# ---------------------------------------------------------------------------
# Pallas kernel: one grid step == one (image, pred-tile).
def _matcher_kernel(pred_ref, gt_ref, cost_ref, iou_ref, *,
                    n_cls, n_ang, cls_off, ang_off):
    pred = pred_ref.at[0]            # (F, TN) view of the coalesced pred slab
    gt = gt_ref[0]                   # (G, F)  coalesced gt slab (tiny)

    # --- box pieces ----------------------------------------------------------
    box = pred[_BOX_OFF:_BOX_OFF + 4, :]                      # (4, TN) xyxy
    px1, py1 = box[0:1, :], box[1:2, :]                       # (1, TN)
    px2, py2 = box[2:3, :], box[3:4, :]
    gx1, gy1 = gt[:, 0:1], gt[:, 1:2]                         # (G, 1)
    gx2, gy2 = gt[:, 2:3], gt[:, 3:4]
    inv_fx = gt[0:1, _INV_OFF:_INV_OFF + 1]                   # (1, 1) = 1/W
    inv_fy = gt[0:1, _INV_OFF + 1:_INV_OFF + 2]               # (1, 1) = 1/H

    # --- in-gt / in-center info (get_in_gt_and_in_center_info) ---------------
    pcx = (px1 + px2) * 0.5
    pcy = (py1 + py2) * 0.5
    gcx = (gx1 + gx2) * 0.5
    gcy = (gy1 + gy2) * 0.5
    gw = gx2 - gx1
    gh = gy2 - gy1
    in_box = (pcx > gx1) & (pcx < gx2) & (pcy > gy1) & (pcy < gy2)      # (G, TN)
    r = CENTER_RADIUS
    in_ctr = ((pcx > gcx - r * gw) & (pcx < gcx + r * gw) &
              (pcy > gcy - r * gh) & (pcy < gcy + r * gh))              # (G, TN)
    in_both = in_box & in_ctr
    valid = jnp.max((in_box | in_ctr).astype(jnp.float32),
                    axis=0, keepdims=True) > 0.0                        # (1, TN)

    # --- focal classification cost: gather gt-class logits FIRST -------------
    cls = pred[cls_off:cls_off + n_cls, :]                    # (C, TN) logits
    lab_oh = gt[:, cls_off:cls_off + n_cls]                   # (G, C) one-hot
    xg = jnp.dot(lab_oh, cls, preferred_element_type=jnp.float32)       # (G, TN)
    e = jnp.exp(-jnp.abs(xg))
    l1p = jnp.log1p(e)                                        # softplus(-|x|)
    p = jnp.where(xg >= 0.0, 1.0, e) / (1.0 + e)              # sigmoid(x), exact
    neg_logsig = l1p + jnp.maximum(-xg, 0.0)                  # -log(sigmoid)   = softplus(-x)
    neg_log1m = l1p + jnp.maximum(xg, 0.0)                    # -log(1-sigmoid) = softplus(x)
    one_mp = 1.0 - p
    cls_cost = (FOCAL_ALPHA * one_mp * one_mp * neg_logsig -
                (1.0 - FOCAL_ALPHA) * p * p * neg_log1m) * CLS_WEIGHT   # (G, TN)

    # --- normalized L1 bbox cost (normalization fused in-kernel) -------------
    reg_cost = ((jnp.abs(px1 - gx1) + jnp.abs(px2 - gx2)) * inv_fx +
                (jnp.abs(py1 - gy1) + jnp.abs(py2 - gy2)) * inv_fy) * REG_WEIGHT

    # --- pairwise IoU / GIoU ---------------------------------------------------
    area_p = (px2 - px1) * (py2 - py1)                        # (1, TN)
    area_g = (gx2 - gx1) * (gy2 - gy1)                        # (G, 1)
    iw = jnp.maximum(jnp.minimum(px2, gx2) - jnp.maximum(px1, gx1), 0.0)
    ih = jnp.maximum(jnp.minimum(py2, gy2) - jnp.maximum(py1, gy1), 0.0)
    inter = iw * ih
    union = jnp.maximum(area_p + area_g - inter, IOU_EPS)
    iou = inter / union                                       # (G, TN)
    ew = jnp.maximum(px2, gx2) - jnp.minimum(px1, gx1)
    eh = jnp.maximum(py2, gy2) - jnp.minimum(py1, gy1)
    enclose = jnp.maximum(ew * eh, IOU_EPS)
    giou = iou - (enclose - union) / enclose
    iou_cost = -giou * IOU_WEIGHT

    # --- angle-branch BCE cost (algebraically fused, exact) -------------------
    ang = pred[ang_off:ang_off + n_ang, :]                    # (A, TN)
    ang_oh = gt[:, ang_off:ang_off + n_ang]                   # (G, A)
    sp = jnp.log1p(jnp.exp(-jnp.abs(ang))) + jnp.maximum(ang, 0.0)      # softplus(ang)
    sp_sum = jnp.sum(sp, axis=0, keepdims=True)               # (1, TN)
    xg_ang = jnp.dot(ang_oh, ang, preferred_element_type=jnp.float32)   # (G, TN)
    ang_cost = (sp_sum - xg_ang) * (ANGLE_WEIGHT / n_ang)

    # --- total cost -------------------------------------------------------------
    cost = cls_cost + reg_cost + iou_cost + ang_cost
    cost = cost + jnp.where(in_both, 0.0, 100.0)              # ~in_boxes_and_center * 100
    cost = cost + jnp.where(valid, 0.0, 10000.0)              # cost[~valid_mask] += 10000

    cost_ref[0] = cost                                        # (G, TN) lane-dense store
    iou_ref[0] = iou                                          # (G, TN) lane-dense store


def _choose_tile_n(n_pad, batch):
    """Largest 128-multiple tile (<=512) dividing n_pad; prefer >=2 tiles when
    batch == 1 so both TensorCores (v7x) get parallel grid steps."""
    cands = [t for t in (512, 384, 256, 128) if n_pad % t == 0]
    tn = cands[0] if cands else n_pad
    if batch == 1:
        for t in cands:
            if n_pad // t >= 2:
                tn = t
                break
    return tn


def compute_cost_and_iou(pred_boxes, gt_boxes, pred_logits, lab_oh,
                         angle_cls, ang_oh, factors):
    """Runs the Pallas kernel over the batch; returns (cost, iou) in (B,G,N)."""
    B, N, _ = pred_boxes.shape
    G = gt_boxes.shape[1]
    C = pred_logits.shape[2]
    A = angle_cls.shape[2]

    cls_off = _SEC_ALIGN
    ang_off = cls_off + _round_up(C, _SEC_ALIGN)
    F = ang_off + _round_up(A, _SEC_ALIGN)
    n_pad = _round_up(N, 128)
    tn = _choose_tile_n(n_pad, B)

    # Coalesced pred-side slab (B, F, n_pad): one DMA per grid step.
    pred_all = jnp.zeros((B, F, n_pad), jnp.float32)
    pred_all = pred_all.at[:, 0:4, :N].set(
        jnp.transpose(pred_boxes, (0, 2, 1)).astype(jnp.float32))
    pred_all = pred_all.at[:, cls_off:cls_off + C, :N].set(
        jnp.transpose(pred_logits, (0, 2, 1)).astype(jnp.float32))
    pred_all = pred_all.at[:, ang_off:ang_off + A, :N].set(
        jnp.transpose(angle_cls, (0, 2, 1)).astype(jnp.float32))

    # Coalesced gt-side slab (B, G, F): boxes, 1/factor scalars, one-hots.
    inv_f = 1.0 / factors.astype(jnp.float32)                           # (B, 4)
    gt_all = jnp.zeros((B, G, F), jnp.float32)
    gt_all = gt_all.at[:, :, 0:4].set(gt_boxes.astype(jnp.float32))
    gt_all = gt_all.at[:, :, _INV_OFF].set(jnp.broadcast_to(inv_f[:, 0:1], (B, G)))
    gt_all = gt_all.at[:, :, _INV_OFF + 1].set(jnp.broadcast_to(inv_f[:, 1:2], (B, G)))
    gt_all = gt_all.at[:, :, cls_off:cls_off + C].set(lab_oh.astype(jnp.float32))
    gt_all = gt_all.at[:, :, ang_off:ang_off + A].set(ang_oh.astype(jnp.float32))

    kernel = partial(_matcher_kernel, n_cls=C, n_ang=A,
                     cls_off=cls_off, ang_off=ang_off)

    cost, iou = pl.pallas_call(
        kernel,
        out_shape=(jax.ShapeDtypeStruct((B, G, n_pad), jnp.float32),
                   jax.ShapeDtypeStruct((B, G, n_pad), jnp.float32)),
        grid_spec=pltpu.PrefetchScalarGridSpec(
            num_scalar_prefetch=0,
            grid=(B, n_pad // tn),
            in_specs=[pl.BlockSpec((1, F, tn), lambda b, n: (b, 0, n)),
                      pl.BlockSpec((1, G, F), lambda b, n: (b, 0, 0))],
            out_specs=[pl.BlockSpec((1, G, tn), lambda b, n: (b, 0, n)),
                       pl.BlockSpec((1, G, tn), lambda b, n: (b, 0, n))]),
        compiler_params=pltpu.CompilerParams(
            dimension_semantics=("parallel", "parallel")),
    )(pred_all, gt_all)
    # Drop padded pred columns before matching.
    return cost[:, :, :N], iou[:, :, :N]


# ---------------------------------------------------------------------------
# Dynamic-k matching (data-dependent; plain JAX outside the kernel, (G,N) layout).
def _dynamic_k_core(cost_gn, iou_gn, candidate_topk):
    """Returns the (G, N) matching matrix, matching the torch reference logic."""
    cost_gn = jnp.asarray(cost_gn, jnp.float32)
    iou_gn = jnp.asarray(iou_gn, jnp.float32)
    G, N = cost_gn.shape
    k = min(candidate_topk, N)

    topk_ious, _ = jax.lax.top_k(iou_gn, k)                            # (G, k)
    dynamic_ks = jnp.maximum(topk_ious.sum(-1).astype(jnp.int32), 1)   # (G,), <= k

    # per-gt: select dynamic_k smallest-cost preds.  dynamic_k <= candidate_topk,
    # so a single size-k top_k replaces the double argsort.
    _, low_idx = jax.lax.top_k(-cost_gn, k)                            # (G, k) ascending cost
    sel = (jnp.arange(k)[None, :] < dynamic_ks[:, None]).astype(jnp.float32)
    matching = jnp.zeros((G, N), jnp.float32)
    matching = matching.at[jnp.arange(G)[:, None], low_idx].add(sel)   # (G, N)

    # resolve preds matched to >1 gt: keep min-cost gt only
    prior_multi = matching.sum(0) > 1                                  # (N,)
    pred_best_gt = jnp.argmin(cost_gn, axis=0)                         # (N,)
    onehot_gt = jax.nn.one_hot(pred_best_gt, G, dtype=jnp.float32).T   # (G, N)
    matching = jnp.where(prior_multi[None, :], onehot_gt, matching)

    # repair loop: make sure every gt gets at least one pred
    # TODO(synk): torch raises RuntimeError after 999 iterations; here the loop
    # simply stops (never triggered at these sizes).
    def cond(state):
        _c, m, num = state
        return jnp.any(m.sum(1) == 0) & (num <= 999)

    def body(state):
        c, m, num = state
        matched_pred = m.sum(0) > 0                                    # (N,)
        c = c + matched_pred[None, :].astype(jnp.float32) * 100000.0
        unmatched_gt = m.sum(1) == 0                                   # (G,)
        gt_best_pred = jnp.argmin(c, axis=1)                           # (G,)
        add = jax.nn.one_hot(gt_best_pred, N, dtype=jnp.float32)       # (G, N)
        m = jnp.where(unmatched_gt[:, None], add, m)

        # torch: resets rows in the *stale* prior_match_gt_mask using the
        # current (penalized) cost whenever any pred is multi-matched.
        multi = jnp.any(m.sum(0) > 1)
        pred_best = jnp.argmin(c, axis=0)                              # (N,)
        oc = jax.nn.one_hot(pred_best, G, dtype=jnp.float32).T         # (G, N)
        m = jnp.where(multi & prior_multi[None, :], oc, m)
        return c, m, num + 1

    _, matching, _ = jax.lax.while_loop(cond, body,
                                        (cost_gn, matching, jnp.int32(0)))
    return matching


@partial(jax.jit, static_argnames=("candidate_topk",))
def match_batch(pred_boxes, gt_boxes, pred_logits, lab_oh, angle_cls, ang_oh,
                factors, *, candidate_topk=CANDIDATE_TOPK):
    """Cost/IoU kernel + batched dynamic-k; returns (B, G, N) matching matrix."""
    cost, iou = compute_cost_and_iou(
        pred_boxes, gt_boxes, pred_logits, lab_oh, angle_cls, ang_oh, factors)
    matching = jax.vmap(lambda c, o: _dynamic_k_core(c, o, candidate_topk))(cost, iou)
    return matching


# ---------------------------------------------------------------------------
class AngleBranchDiffusionDetMatcherPallas:
    """Forward-pass equivalent of the PyTorch matcher (no learned weights)."""

    def __init__(self, center_radius=CENTER_RADIUS, candidate_topk=CANDIDATE_TOPK):
        self.center_radius = center_radius
        self.candidate_topk = candidate_topk

    def forward(self, outputs, batch_gt_instances, batch_img_metas):
        pred_logits = outputs['pred_logits']      # (B, N, C)
        pred_boxes = outputs['pred_boxes']        # (B, N, 4) xyxy
        angle_cls = outputs['angle_cls']          # (B, N, A)
        B, N, C = pred_logits.shape
        A = angle_cls.shape[2]

        # TODO(synk): assumes the same gt count per image (batched G); per-image
        # variable / zero gt counts would need a padding mask upstream.
        gt_boxes = jnp.stack([g['bboxes'] for g in batch_gt_instances])     # (B, G, 4)
        G = gt_boxes.shape[1]
        if G == 0:
            return [(np.zeros((N,), dtype=bool), np.zeros((0,), dtype=np.int64))
                    for _ in range(B)]

        gt_labels = jnp.stack([g['labels'] for g in batch_gt_instances])    # (B, G)
        gt_angles = jnp.stack([g['angle_cls'] for g in batch_gt_instances]) # (B, G)
        lab_oh = jax.nn.one_hot(gt_labels, C, dtype=jnp.float32)            # (B, G, C)
        ang_oh = jax.nn.one_hot(gt_angles, A, dtype=jnp.float32)            # (B, G, A)
        factors = jnp.stack([
            jnp.array([m['img_shape'][1], m['img_shape'][0],
                       m['img_shape'][1], m['img_shape'][0]], dtype=jnp.float32)
            for m in batch_img_metas])                                      # (B, 4)

        matching = match_batch(pred_boxes, gt_boxes, pred_logits, lab_oh,
                               angle_cls, ang_oh, factors,
                               candidate_topk=self.candidate_topk)
        m_np = np.asarray(jax.block_until_ready(matching))                  # single host sync

        batch_indices = []
        for i in range(B):
            m = m_np[i]                                                     # (G, N)
            fg_mask_inboxes = m.sum(0) > 0                                  # per-pred
            matched_gt_inds = m[:, fg_mask_inboxes].argmax(0).astype(np.int64)
            batch_indices.append((fg_mask_inboxes, matched_gt_inds))
        return batch_indices


# ---------------------------------------------------------------------------
if __name__ == "__main__":
    key = jax.random.PRNGKey(0)
    B, N, G, C, A = 2, 128, 8, 16, 32
    H = W = 256

    keys = jax.random.split(key, 8)

    def rand_boxes(k, n):
        kc, ks = jax.random.split(k)
        ctr = jax.random.uniform(kc, (n, 2), minval=40.0, maxval=216.0)
        wh = jax.random.uniform(ks, (n, 2), minval=16.0, maxval=80.0)
        return jnp.concatenate([ctr - wh * 0.5, ctr + wh * 0.5], axis=-1)

    pred_boxes = jnp.stack([rand_boxes(keys[0], N), rand_boxes(keys[1], N)])
    pred_logits = jax.random.normal(keys[2], (B, N, C), dtype=jnp.float32)
    angle_cls = jax.random.normal(keys[3], (B, N, A), dtype=jnp.float32)

    gk = jax.random.split(keys[4], B)
    lk = jax.random.split(keys[5], B)
    ak = jax.random.split(keys[6], B)
    batch_gt_instances = []
    for i in range(B):
        batch_gt_instances.append(dict(
            bboxes=rand_boxes(gk[i], G),
            labels=jax.random.randint(lk[i], (G,), 0, C),
            angle_cls=jax.random.randint(ak[i], (G,), 0, A)))
    batch_img_metas = [dict(img_shape=(H, W)) for _ in range(B)]

    matcher = AngleBranchDiffusionDetMatcherPallas()
    outputs = dict(pred_logits=pred_logits, pred_boxes=pred_boxes, angle_cls=angle_cls)
    results = matcher.forward(outputs, batch_gt_instances, batch_img_metas)

    for fg_mask, matched_gt_inds in results:
        assert fg_mask.shape == (N,)
        assert matched_gt_inds.shape[0] == int(fg_mask.sum())
        if matched_gt_inds.size:
            assert matched_gt_inds.min() >= 0 and matched_gt_inds.max() < G

    print("KERNEL_OK")
</pallas_src>

<mosaic_0001>
module attributes {stable_mosaic.version = 11 : i64} {
  func.func private @main(%arg0: i32) attributes {dimension_semantics = [#tpu.dimension_semantics<core_parallel>], iteration_bounds = array<i64: 2>, tpu.core_type = #tpu.core_type<sc_scalar_subcore>, window_params = []} {
    return
  }
}

module attributes {stable_mosaic.version = 11 : i64} {
  func.func private @main(%arg0: i32) attributes {dimension_semantics = [#tpu.dimension_semantics<core_parallel>], iteration_bounds = array<i64: 2>, tpu.core_type = #tpu.core_type<sc_scalar_subcore>, window_params = []} {
    return
  }
}

module attributes {stable_mosaic.version = 11 : i64} {
  func.func @_matcher_kernel(%arg0: i32, %arg1: i32, %arg2: memref<1x56x128xf32, #tpu.memory_space<vmem>>, %arg3: memref<1x8x56xf32, #tpu.memory_space<vmem>>, %arg4: memref<1x8x128xf32, #tpu.memory_space<vmem>>, %arg5: memref<1x8x128xf32, #tpu.memory_space<vmem>>) attributes {dimension_semantics = [#tpu.dimension_semantics<parallel>, #tpu.dimension_semantics<parallel>], iteration_bounds = array<i64: 2, 1>, scalar_prefetch = 0 : i64, scratch_operands = 0 : i64, tpu.core_type = #tpu.core_type<tc>, window_params = [{transform_indices = @transform_0, window_bounds = array<i64: 1, 56, 128>}, {transform_indices = @transform_1, window_bounds = array<i64: 1, 8, 56>}, {transform_indices = @transform_2, window_bounds = array<i64: 1, 8, 128>}, {transform_indices = @transform_3, window_bounds = array<i64: 1, 8, 128>}]} {
    %c0 = arith.constant 0 : index
    %c0_0 = arith.constant 0 : index
    %c0_1 = arith.constant 0 : index
    %0 = vector.load %arg3[%c0, %c0_0, %c0_1] : memref<1x8x56xf32, #tpu.memory_space<vmem>>, vector<1x8x56xf32>
    %1 = vector.shape_cast %0 : vector<1x8x56xf32> to vector<8x56xf32>
    %c0_i32 = arith.constant 0 : i32
    %c0_i32_2 = arith.constant 0 : i32
    %c0_i32_3 = arith.constant 0 : i32
    %2 = tpu.memref_slice %arg2[%c0_i32, %c0_i32_2, %c0_i32_3] : memref<1x56x128xf32, #tpu.memory_space<vmem>> -> memref<1x56x128xf32, #tpu.memory_space<vmem>>
    %3 = tpu.memref_squeeze %2 : memref<1x56x128xf32, #tpu.memory_space<vmem>> -> memref<56x128xf32, #tpu.memory_space<vmem>>
    %c0_4 = arith.constant 0 : index
    %c0_5 = arith.constant 0 : index
    %4 = vector.load %3[%c0_4, %c0_5] : memref<56x128xf32, #tpu.memory_space<vmem>>, vector<4x128xf32>
    %5 = vector.extract_strided_slice %4 {offsets = [0, 0], sizes = [1, 128], strides = [1, 1]} : vector<4x128xf32> to vector<1x128xf32>
    %6 = vector.extract_strided_slice %4 {offsets = [1, 0], sizes = [1, 128], strides = [1, 1]} : vector<4x128xf32> to vector<1x128xf32>
    %7 = vector.extract_strided_slice %4 {offsets = [2, 0], sizes = [1, 128], strides = [1, 1]} : vector<4x128xf32> to vector<1x128xf32>
    %8 = vector.extract_strided_slice %4 {offsets = [3, 0], sizes = [1, 128], strides = [1, 1]} : vector<4x128xf32> to vector<1x128xf32>
    %9 = vector.extract_strided_slice %1 {offsets = [0, 0], sizes = [8, 1], strides = [1, 1]} : vector<8x56xf32> to vector<8x1xf32>
    %10 = vector.extract_strided_slice %1 {offsets = [0, 1], sizes = [8, 1], strides = [1, 1]} : vector<8x56xf32> to vector<8x1xf32>
    %11 = vector.extract_strided_slice %1 {offsets = [0, 2], sizes = [8, 1], strides = [1, 1]} : vector<8x56xf32> to vector<8x1xf32>
    %12 = vector.extract_strided_slice %1 {offsets = [0, 3], sizes = [8, 1], strides = [1, 1]} : vector<8x56xf32> to vector<8x1xf32>
    %13 = vector.extract_strided_slice %1 {offsets = [0, 4], sizes = [1, 1], strides = [1, 1]} : vector<8x56xf32> to vector<1x1xf32>
    %14 = vector.extract_strided_slice %1 {offsets = [0, 5], sizes = [1, 1], strides = [1, 1]} : vector<8x56xf32> to vector<1x1xf32>
    %15 = arith.addf %5, %7 : vector<1x128xf32>
    %cst = arith.constant 5.000000e-01 : f32
    %16 = vector.broadcast %cst : f32 to vector<1x128xf32>
    %17 = arith.mulf %15, %16 : vector<1x128xf32>
    %18 = arith.addf %6, %8 : vector<1x128xf32>
    %cst_6 = arith.constant 5.000000e-01 : f32
    %19 = vector.broadcast %cst_6 : f32 to vector<1x128xf32>
    %20 = arith.mulf %18, %19 : vector<1x128xf32>
    %21 = arith.addf %9, %11 : vector<8x1xf32>
    %cst_7 = arith.constant 5.000000e-01 : f32
    %22 = vector.broadcast %cst_7 : f32 to vector<8x1xf32>
    %23 = arith.mulf %21, %22 : vector<8x1xf32>
    %24 = arith.addf %10, %12 : vector<8x1xf32>
    %cst_8 = arith.constant 5.000000e-01 : f32
    %25 = vector.broadcast %cst_8 : f32 to vector<8x1xf32>
    %26 = arith.mulf %24, %25 : vector<8x1xf32>
    %27 = arith.subf %11, %9 : vector<8x1xf32>
    %28 = arith.subf %12, %10 : vector<8x1xf32>
    %29 = vector.broadcast %17 : vector<1x128xf32> to vector<8x128xf32>
    %30 = vector.broadcast %9 : vector<8x1xf32> to vector<8x128xf32>
    %31 = arith.cmpf ogt, %29, %30 : vector<8x128xf32>
    %32 = vector.broadcast %17 : vector<1x128xf32> to vector<8x128xf32>
    %33 = vector.broadcast %11 : vector<8x1xf32> to vector<8x128xf32>
    %34 = arith.cmpf olt, %32, %33 : vector<8x128xf32>
    %35 = arith.andi %31, %34 : vector<8x128xi1>
    %36 = vector.broadcast %20 : vector<1x128xf32> to vector<8x128xf32>
    %37 = vector.broadcast %10 : vector<8x1xf32> to vector<8x128xf32>
    %38 = arith.cmpf ogt, %36, %37 : vector<8x128xf32>
    %39 = arith.andi %35, %38 : vector<8x128xi1>
    %40 = vector.broadcast %20 : vector<1x128xf32> to vector<8x128xf32>
    %41 = vector.broadcast %12 : vector<8x1xf32> to vector<8x128xf32>
    %42 = arith.cmpf olt, %40, %41 : vector<8x128xf32>
    %43 = arith.andi %39, %42 : vector<8x128xi1>
    %cst_9 = arith.constant 2.500000e+00 : f32
    %44 = vector.broadcast %cst_9 : f32 to vector<8x1xf32>
    %45 = arith.mulf %44, %27 : vector<8x1xf32>
    %46 = arith.subf %23, %45 : vector<8x1xf32>
    %47 = vector.broadcast %17 : vector<1x128xf32> to vector<8x128xf32>
    %48 = vector.broadcast %46 : vector<8x1xf32> to vector<8x128xf32>
    %49 = arith.cmpf ogt, %47, %48 : vector<8x128xf32>
    %cst_10 = arith.constant 2.500000e+00 : f32
    %50 = vector.broadcast %cst_10 : f32 to vector<8x1xf32>
    %51 = arith.mulf %50, %27 : vector<8x1xf32>
    %52 = arith.addf %23, %51 : vector<8x1xf32>
    %53 = vector.broadcast %17 : vector<1x128xf32> to vector<8x128xf32>
    %54 = vector.broadcast %52 : vector<8x1xf32> to vector<8x128xf32>
    %55 = arith.cmpf olt, %53, %54 : vector<8x128xf32>
    %56 = arith.andi %49, %55 : vector<8x128xi1>
    %cst_11 = arith.constant 2.500000e+00 : f32
    %57 = vector.broadcast %cst_11 : f32 to vector<8x1xf32>
    %58 = arith.mulf %57, %28 : vector<8x1xf32>
    %59 = arith.subf %26, %58 : vector<8x1xf32>
    %60 = vector.broadcast %20 : vector<1x128xf32> to vector<8x128xf32>
    %61 = vector.broadcast %59 : vector<8x1xf32> to vector<8x128xf32>
    %62 = arith.cmpf ogt, %60, %61 : vector<8x128xf32>
    %63 = arith.andi %56, %62 : vector<8x128xi1>
    %cst_12 = arith.constant 2.500000e+00 : f32
    %64 = vector.broadcast %cst_12 : f32 to vector<8x1xf32>
    %65 = arith.mulf %64, %28 : vector<8x1xf32>
    %66 = arith.addf %26, %65 : vector<8x1xf32>
    %67 = vector.broadcast %20 : vector<1x128xf32> to vector<8x128xf32>
    %68 = vector.broadcast %66 : vector<8x1xf32> to vector<8x128xf32>
    %69 = arith.cmpf olt, %67, %68 : vector<8x128xf32>
    %70 = arith.andi %63, %69 : vector<8x128xi1>
    %71 = arith.andi %43, %70 : vector<8x128xi1>
    %72 = arith.ori %43, %70 : vector<8x128xi1>
    %73 = arith.extui %72 : vector<8x128xi1> to vector<8x128xi32>
    %74 = arith.sitofp %73 : vector<8x128xi32> to vector<8x128xf32>
    %cst_13 = arith.constant dense<0xFF800000> : vector<128xf32>
    %75 = vector.multi_reduction <maximumf>, %74, %cst_13 [0] : vector<8x128xf32> to vector<128xf32>
    %76 = vector.shape_cast %75 : vector<128xf32> to vector<1x128xf32>
    %cst_14 = arith.constant 0.000000e+00 : f32
    %77 = vector.broadcast %cst_14 : f32 to vector<1x128xf32>
    %78 = arith.cmpf ogt, %76, %77 : vector<1x128xf32>
    %c0_i32_15 = arith.constant 0 : i32
    %c0_i32_16 = arith.constant 0 : i32
    %c0_i32_17 = arith.constant 0 : i32
    %79 = tpu.memref_slice %arg2[%c0_i32_15, %c0_i32_16, %c0_i32_17] : memref<1x56x128xf32, #tpu.memory_space<vmem>> -> memref<1x56x128xf32, #tpu.memory_space<vmem>>
    %80 = tpu.memref_squeeze %79 : memref<1x56x128xf32, #tpu.memory_space<vmem>> -> memref<56x128xf32, #tpu.memory_space<vmem>>
    %c8 = arith.constant 8 : index
    %c0_18 = arith.constant 0 : index
    %81 = vector.load %80[%c8, %c0_18] : memref<56x128xf32, #tpu.memory_space<vmem>>, vector<16x128xf32>
    %82 = vector.extract_strided_slice %1 {offsets = [0, 8], sizes = [8, 16], strides = [1, 1]} : vector<8x56xf32> to vector<8x16xf32>
    %cst_19 = arith.constant dense<0.000000e+00> : vector<8x128xf32>
    %83 = tpu.matmul %82, %81, %cst_19 {dimension_numbers = #tpu.dot_dimension_numbers<[1], [0], [0], [1], [0, 0, 1, 1], [], []>} : vector<8x16xf32>, vector<16x128xf32>, vector<8x128xf32> -> vector<8x128xf32>
    %84 = math.absf %83 : vector<8x128xf32>
    %cst_20 = arith.constant 0.000000e+00 : f32
    %85 = vector.broadcast %cst_20 : f32 to vector<8x128xf32>
    %86 = arith.subf %85, %84 : vector<8x128xf32>
    %87 = math.exp %86 : vector<8x128xf32>
    %88 = math.log1p %87 : vector<8x128xf32>
    %cst_21 = arith.constant 0.000000e+00 : f32
    %89 = vector.broadcast %cst_21 : f32 to vector<8x128xf32>
    %90 = arith.cmpf oge, %83, %89 : vector<8x128xf32>
    %cst_22 = arith.constant 1.000000e+00 : f32
    %91 = vector.broadcast %cst_22 : f32 to vector<8x128xf32>
    %92 = arith.select %90, %91, %87 : vector<8x128xi1>, vector<8x128xf32>
    %cst_23 = arith.constant 1.000000e+00 : f32
    %93 = vector.broadcast %cst_23 : f32 to vector<8x128xf32>
    %94 = arith.addf %93, %87 : vector<8x128xf32>
    %95 = arith.divf %92, %94 : vector<8x128xf32>
    %cst_24 = arith.constant 0.000000e+00 : f32
    %96 = vector.broadcast %cst_24 : f32 to vector<8x128xf32>
    %97 = arith.subf %96, %83 : vector<8x128xf32>
    %cst_25 = arith.constant 0.000000e+00 : f32
    %98 = vector.broadcast %cst_25 : f32 to vector<8x128xf32>
    %99 = arith.maximumf %97, %98 : vector<8x128xf32>
    %100 = arith.addf %88, %99 : vector<8x128xf32>
    %cst_26 = arith.constant 0.000000e+00 : f32
    %101 = vector.broadcast %cst_26 : f32 to vector<8x128xf32>
    %102 = arith.maximumf %83, %101 : vector<8x128xf32>
    %103 = arith.addf %88, %102 : vector<8x128xf32>
    %cst_27 = arith.constant 1.000000e+00 : f32
    %104 = vector.broadcast %cst_27 : f32 to vector<8x128xf32>
    %105 = arith.subf %104, %95 : vector<8x128xf32>
    %cst_28 = arith.constant 2.500000e-01 : f32
    %106 = vector.broadcast %cst_28 : f32 to vector<8x128xf32>
    %107 = arith.mulf %106, %105 : vector<8x128xf32>
    %108 = arith.mulf %107, %105 : vector<8x128xf32>
    %109 = arith.mulf %108, %100 : vector<8x128xf32>
    %cst_29 = arith.constant 7.500000e-01 : f32
    %110 = vector.broadcast %cst_29 : f32 to vector<8x128xf32>
    %111 = arith.mulf %110, %95 : vector<8x128xf32>
    %112 = arith.mulf %111, %95 : vector<8x128xf32>
    %113 = arith.mulf %112, %103 : vector<8x128xf32>
    %114 = arith.subf %109, %113 : vector<8x128xf32>
    %cst_30 = arith.constant 2.000000e+00 : f32
    %115 = vector.broadcast %cst_30 : f32 to vector<8x128xf32>
    %116 = arith.mulf %114, %115 : vector<8x128xf32>
    %117 = vector.broadcast %5 : vector<1x128xf32> to vector<8x128xf32>
    %118 = vector.broadcast %9 : vector<8x1xf32> to vector<8x128xf32>
    %119 = arith.subf %117, %118 : vector<8x128xf32>
    %120 = math.absf %119 : vector<8x128xf32>
    %121 = vector.broadcast %7 : vector<1x128xf32> to vector<8x128xf32>
    %122 = vector.broadcast %11 : vector<8x1xf32> to vector<8x128xf32>
    %123 = arith.subf %121, %122 : vector<8x128xf32>
    %124 = math.absf %123 : vector<8x128xf32>
    %125 = arith.addf %120, %124 : vector<8x128xf32>
    %126 = vector.broadcast %13 : vector<1x1xf32> to vector<8x128xf32>
    %127 = arith.mulf %125, %126 : vector<8x128xf32>
    %128 = vector.broadcast %6 : vector<1x128xf32> to vector<8x128xf32>
    %129 = vector.broadcast %10 : vector<8x1xf32> to vector<8x128xf32>
    %130 = arith.subf %128, %129 : vector<8x128xf32>
    %131 = math.absf %130 : vector<8x128xf32>
    %132 = vector.broadcast %8 : vector<1x128xf32> to vector<8x128xf32>
    %133 = vector.broadcast %12 : vector<8x1xf32> to vector<8x128xf32>
    %134 = arith.subf %132, %133 : vector<8x128xf32>
    %135 = math.absf %134 : vector<8x128xf32>
    %136 = arith.addf %131, %135 : vector<8x128xf32>
    %137 = vector.broadcast %14 : vector<1x1xf32> to vector<8x128xf32>
    %138 = arith.mulf %136, %137 : vector<8x128xf32>
    %139 = arith.addf %127, %138 : vector<8x128xf32>
    %cst_31 = arith.constant 5.000000e+00 : f32
    %140 = vector.broadcast %cst_31 : f32 to vector<8x128xf32>
    %141 = arith.mulf %139, %140 : vector<8x128xf32>
    %142 = arith.subf %7, %5 : vector<1x128xf32>
    %143 = arith.subf %8, %6 : vector<1x128xf32>
    %144 = arith.mulf %142, %143 : vector<1x128xf32>
    %145 = arith.subf %11, %9 : vector<8x1xf32>
    %146 = arith.subf %12, %10 : vector<8x1xf32>
    %147 = arith.mulf %145, %146 : vector<8x1xf32>
    %148 = vector.broadcast %7 : vector<1x128xf32> to vector<8x128xf32>
    %149 = vector.broadcast %11 : vector<8x1xf32> to vector<8x128xf32>
    %150 = arith.minimumf %148, %149 : vector<8x128xf32>
    %151 = vector.broadcast %5 : vector<1x128xf32> to vector<8x128xf32>
    %152 = vector.broadcast %9 : vector<8x1xf32> to vector<8x128xf32>
    %153 = arith.maximumf %151, %152 : vector<8x128xf32>
    %154 = arith.subf %150, %153 : vector<8x128xf32>
    %cst_32 = arith.constant 0.000000e+00 : f32
    %155 = vector.broadcast %cst_32 : f32 to vector<8x128xf32>
    %156 = arith.maximumf %154, %155 : vector<8x128xf32>
    %157 = vector.broadcast %8 : vector<1x128xf32> to vector<8x128xf32>
    %158 = vector.broadcast %12 : vector<8x1xf32> to vector<8x128xf32>
    %159 = arith.minimumf %157, %158 : vector<8x128xf32>
    %160 = vector.broadcast %6 : vector<1x128xf32> to vector<8x128xf32>
    %161 = vector.broadcast %10 : vector<8x1xf32> to vector<8x128xf32>
    %162 = arith.maximumf %160, %161 : vector<8x128xf32>
    %163 = arith.subf %159, %162 : vector<8x128xf32>
    %cst_33 = arith.constant 0.000000e+00 : f32
    %164 = vector.broadcast %cst_33 : f32 to vector<8x128xf32>
    %165 = arith.maximumf %163, %164 : vector<8x128xf32>
    %166 = arith.mulf %156, %165 : vector<8x128xf32>
    %167 = vector.broadcast %144 : vector<1x128xf32> to vector<8x128xf32>
    %168 = vector.broadcast %147 : vector<8x1xf32> to vector<8x128xf32>
    %169 = arith.addf %167, %168 : vector<8x128xf32>
    %170 = arith.subf %169, %166 : vector<8x128xf32>
    %cst_34 = arith.constant 9.99999997E-7 : f32
    %171 = vector.broadcast %cst_34 : f32 to vector<8x128xf32>
    %172 = arith.maximumf %170, %171 : vector<8x128xf32>
    %173 = arith.divf %166, %172 : vector<8x128xf32>
    %174 = vector.broadcast %7 : vector<1x128xf32> to vector<8x128xf32>
    %175 = vector.broadcast %11 : vector<8x1xf32> to vector<8x128xf32>
    %176 = arith.maximumf %174, %175 : vector<8x128xf32>
    %177 = vector.broadcast %5 : vector<1x128xf32> to vector<8x128xf32>
    %178 = vector.broadcast %9 : vector<8x1xf32> to vector<8x128xf32>
    %179 = arith.minimumf %177, %178 : vector<8x128xf32>
    %180 = arith.subf %176, %179 : vector<8x128xf32>
    %181 = vector.broadcast %8 : vector<1x128xf32> to vector<8x128xf32>
    %182 = vector.broadcast %12 : vector<8x1xf32> to vector<8x128xf32>
    %183 = arith.maximumf %181, %182 : vector<8x128xf32>
    %184 = vector.broadcast %6 : vector<1x128xf32> to vector<8x128xf32>
    %185 = vector.broadcast %10 : vector<8x1xf32> to vector<8x128xf32>
    %186 = arith.minimumf %184, %185 : vector<8x128xf32>
    %187 = arith.subf %183, %186 : vector<8x128xf32>
    %188 = arith.mulf %180, %187 : vector<8x128xf32>
    %cst_35 = arith.constant 9.99999997E-7 : f32
    %189 = vector.broadcast %cst_35 : f32 to vector<8x128xf32>
    %190 = arith.maximumf %188, %189 : vector<8x128xf32>
    %191 = arith.subf %190, %172 : vector<8x128xf32>
    %192 = arith.divf %191, %190 : vector<8x128xf32>
    %193 = arith.subf %173, %192 : vector<8x128xf32>
    %cst_36 = arith.constant 0.000000e+00 : f32
    %194 = vector.broadcast %cst_36 : f32 to vector<8x128xf32>
    %195 = arith.subf %194, %193 : vector<8x128xf32>
    %cst_37 = arith.constant 2.000000e+00 : f32
    %196 = vector.broadcast %cst_37 : f32 to vector<8x128xf32>
    %197 = arith.mulf %195, %196 : vector<8x128xf32>
    %c0_i32_38 = arith.constant 0 : i32
    %c0_i32_39 = arith.constant 0 : i32
    %c0_i32_40 = arith.constant 0 : i32
    %198 = tpu.memref_slice %arg2[%c0_i32_38, %c0_i32_39, %c0_i32_40] : memref<1x56x128xf32, #tpu.memory_space<vmem>> -> memref<1x56x128xf32, #tpu.memory_space<vmem>>
    %199 = tpu.memref_squeeze %198 : memref<1x56x128xf32, #tpu.memory_space<vmem>> -> memref<56x128xf32, #tpu.memory_space<vmem>>
    %c24 = arith.constant 24 : index
    %c0_41 = arith.constant 0 : index
    %200 = vector.load %199[%c24, %c0_41] : memref<56x128xf32, #tpu.memory_space<vmem>>, vector<32x128xf32>
    %201 = vector.extract_strided_slice %1 {offsets = [0, 24], sizes = [8, 32], strides = [1, 1]} : vector<8x56xf32> to vector<8x32xf32>
    %202 = math.absf %200 : vector<32x128xf32>
    %cst_42 = arith.constant 0.000000e+00 : f32
    %203 = vector.broadcast %cst_42 : f32 to vector<32x128xf32>
    %204 = arith.subf %203, %202 : vector<32x128xf32>
    %205 = math.exp %204 : vector<32x128xf32>
    %206 = math.log1p %205 : vector<32x128xf32>
    %cst_43 = arith.constant 0.000000e+00 : f32
    %207 = vector.broadcast %cst_43 : f32 to vector<32x128xf32>
    %208 = arith.maximumf %200, %207 : vector<32x128xf32>
    %209 = arith.addf %206, %208 : vector<32x128xf32>
    %cst_44 = arith.constant dense<0.000000e+00> : vector<128xf32>
    %210 = vector.multi_reduction <add>, %209, %cst_44 [0] : vector<32x128xf32> to vector<128xf32>
    %211 = vector.shape_cast %210 : vector<128xf32> to vector<1x128xf32>
    %cst_45 = arith.constant dense<0.000000e+00> : vector<8x128xf32>
    %212 = tpu.matmul %201, %200, %cst_45 {dimension_numbers = #tpu.dot_dimension_numbers<[1], [0], [0], [1], [0, 0, 1, 1], [], []>} : vector<8x32xf32>, vector<32x128xf32>, vector<8x128xf32> -> vector<8x128xf32>
    %213 = vector.broadcast %211 : vector<1x128xf32> to vector<8x128xf32>
    %214 = arith.subf %213, %212 : vector<8x128xf32>
    %cst_46 = arith.constant 3.125000e-02 : f32
    %215 = vector.broadcast %cst_46 : f32 to vector<8x128xf32>
    %216 = arith.mulf %214, %215 : vector<8x128xf32>
    %217 = arith.addf %116, %141 : vector<8x128xf32>
    %218 = arith.addf %217, %197 : vector<8x128xf32>
    %219 = arith.addf %218, %216 : vector<8x128xf32>
    %cst_47 = arith.constant 0.000000e+00 : f32
    %cst_48 = arith.constant 1.000000e+02 : f32
    %220 = vector.broadcast %cst_47 : f32 to vector<8x128xf32>
    %221 = vector.broadcast %cst_48 : f32 to vector<8x128xf32>
    %222 = arith.select %71, %220, %221 : vector<8x128xi1>, vector<8x128xf32>
    %223 = arith.addf %219, %222 : vector<8x128xf32>
    %cst_49 = arith.constant 0.000000e+00 : f32
    %cst_50 = arith.constant 1.000000e+04 : f32
    %224 = vector.broadcast %cst_49 : f32 to vector<1x128xf32>
    %225 = vector.broadcast %cst_50 : f32 to vector<1x128xf32>
    %226 = arith.select %78, %224, %225 : vector<1x128xi1>, vector<1x128xf32>
    %227 = vector.broadcast %226 : vector<1x128xf32> to vector<8x128xf32>
    %228 = arith.addf %223, %227 : vector<8x128xf32>
    %c0_51 = arith.constant 0 : index
    %c0_52 = arith.constant 0 : index
    %c0_53 = arith.constant 0 : index
    %229 = vector.load %arg4[%c0_51, %c0_52, %c0_53] : memref<1x8x128xf32, #tpu.memory_space<vmem>>, vector<1x8x128xf32>
    %230 = vector.shape_cast %229 : vector<1x8x128xf32> to vector<8x128xf32>
    %231 = vector.shape_cast %228 : vector<8x128xf32> to vector<1x8x128xf32>
    tpu.vector_store %arg4[%c0_51, %c0_52, %c0_53], %231 {strides = array<i32>} : memref<1x8x128xf32, #tpu.memory_space<vmem>>, vector<1x8x128xf32>,
    %c0_54 = arith.constant 0 : index
    %c0_55 = arith.constant 0 : index
    %c0_56 = arith.constant 0 : index
    %232 = vector.load %arg5[%c0_54, %c0_55, %c0_56] : memref<1x8x128xf32, #tpu.memory_space<vmem>>, vector<1x8x128xf32>
    %233 = vector.shape_cast %232 : vector<1x8x128xf32> to vector<8x128xf32>
    %234 = vector.shape_cast %173 : vector<8x128xf32> to vector<1x8x128xf32>
    tpu.vector_store %arg5[%c0_54, %c0_55, %c0_56], %234 {strides = array<i32>} : memref<1x8x128xf32, #tpu.memory_space<vmem>>, vector<1x8x128xf32>,
    return
  }
  func.func @transform_0(%arg0: i32, %arg1: i32) -> (i32, i32, i32) {
    %c0_i32 = arith.constant 0 : i32
    %c0_i32_0 = arith.constant 0 : i32
    return %arg0, %c0_i32, %arg1 : i32, i32, i32
  }
  func.func @transform_1(%arg0: i32, %arg1: i32) -> (i32, i32, i32) {
    %c0_i32 = arith.constant 0 : i32
    %c0_i32_0 = arith.constant 0 : i32
    %c0_i32_1 = arith.constant 0 : i32
    return %arg0, %c0_i32, %c0_i32_0 : i32, i32, i32
  }
  func.func @transform_2(%arg0: i32, %arg1: i32) -> (i32, i32, i32) {
    %c0_i32 = arith.constant 0 : i32
    %c0_i32_0 = arith.constant 0 : i32
    return %arg0, %c0_i32, %arg1 : i32, i32, i32
  }
  func.func @transform_3(%arg0: i32, %arg1: i32) -> (i32, i32, i32) {
    %c0_i32 = arith.constant 0 : i32
    %c0_i32_0 = arith.constant 0 : i32
    return %arg0, %c0_i32, %arg1 : i32, i32, i32
  }
}

</mosaic_0001>

<bundles_post_ra>
// kernel: neg.1
= control target key start
LH: loop header
LB: loop body
LE: loop exit
PB: predicated region body
PF: predicated region fallthrough
CT: control target
= control target key end

     0   :  { %s40_s0 = inlined_call_operand.vmem [shape: f32[2,8,128], index: 0, kind: input, shape index: {}]   ;;  %s41_s1 = inlined_call_operand.vmem [shape: f32[2,8,128], index: 1, kind: output, shape index: {}]  }
   0x1   :  { %v2_v0 = vld [vmem:[%s40_s0] sm:$0xff]  ;;  %v16_v1 = vld [vmem:[%s40_s0 + $0x8] sm:$0xff] }
   0x2   :  { %v5_v2 = vxor.u32 2147483648, %v2_v0  ;;  %v12_v3 = vxor.u32 2147483648, %v16_v1 }
   0x4   :  { %7 = vst [vmem:[%s41_s1] sm:$0xff] %v5_v2  ;;  %17 = vst [vmem:[%s41_s1 + $0x8] sm:$0xff] %v12_v3 }

// kernel: match_batch.1
= control target key start
LH: loop header
LB: loop body
LE: loop exit
PB: predicated region body
PF: predicated region fallthrough
CT: control target
= control target key end

     0   :  { %s1003_s12 = smov 0   ;;  %s1005_s13 = smov 0   ;;  %s1166_s0 = inlined_call_operand.vmem [shape: f32[2,56,128], index: 0, kind: input, shape index: {}]   ;;  %s1167_s1 = inlined_call_operand.vmem [shape: f32[2,8,56], index: 1, kind: input, shape index: {}]   ;;  %s1168_s2 = inlined_call_operand.vmem [shape: f32[2,8,128], index: 2, kind: output, shape index: {0}]   ;;  %s1169_s3 = inlined_call_operand.vmem [shape: f32[2,8,128], index: 3, kind: output, shape index: {1}]  }
   0x1   :  { %s1007_s14 = smov 0  }
   0x2 LB: > { %s26_s15 = sadd.s32 1, %s961_s13  ;;  %p818_p0 = scmp.ge.s32.totalorder %s965_s14, 1  ;;  %s965_s14 = sphi %s1007_s14, %s14_s14   ;;  %s961_s13 = sphi %s1005_s13, %s1175_s13   ;;  %s957_s12 = sphi %s1003_s12, %s1174_s12  }
   0x3   : > { %p28_p1 = scmp.ge.s32.totalorder %s26_s15, 2  ;;  %p170_p2 = scmp.lt.s32.totalorder %s965_s14, 3 }
   0x5   : > { %s1177_s15 = smov (%p28_p1, %s26_s15), 0  ;;  %p171_p3 = pnand %p818_p0, %p170_p2 }
   0x6   : > { %p210_p4 = scmp.lt.s32.totalorder (!%p171_p3), %s957_s12, 1  ;;  %v967_v0 = vmov (!%p171_p3), 0.0|0.0   ;;  %vm968_vm0 = vmmov (!%p171_p3), 0   ;;  %v969_v1 = vmov (!%p171_p3), 0.0   ;;  %v970_v2 = vmov (!%p171_p3), 2   ;;  %s972_s24 = smov (!%p171_p3), 2  }
   0x7   : > { %174 = sbr.rel (%p171_p3) target bundleno = 415 (0x19f), region = 28  ;;  %854 = vmatprep.subr.bf16.mxu0 (!%p171_p3), %v967_v0  ;;  %840 = vmatprep.mubr.msk.f32.mxu0 (!%p171_p3), %vm968_vm0, %v969_v1  ;;  %v971_v3 = vmov (!%p171_p3), 0   ;;  %s973_s25 = smov (!%p171_p3), 120   ;;  %v977_v24 = vmov (!%p171_p3), 3   ;;  %vm331_vm3 = vcmask (!%p171_p3), 130048   ;;  %vm600_vm4 = vcmask (!%p171_p3), 261120  }
   0x8   : > { %857 = vmatprep.subr.bf16.mxu1 (!%p171_p3), %v967_v0  ;;  %851 = vmatprep.mubr.msk.f32.mxu1 (!%p171_p3), %vm968_vm0, %v969_v1  ;;  %s974_s26 = smov (!%p171_p3), 104   ;;  %s975_s27 = smov (!%p171_p3), 126   ;;  %v980_v51 = vmov (!%p171_p3), 1  }
   0x9   : > { %909 = vset.pattern.permute.xlu1 (!%p171_p3), %v970_v2  ;;  %908 = vset.pattern.permute.xlu0 (!%p171_p3), %v971_v3  ;;  %s976_s28 = smov (!%p171_p3), 124   ;;  %s978_s29 = smov (!%p171_p3), 127  }
   0xa   : > { %s979_s30 = smov (!%p171_p3), 123  }
   0xe   : > { %s1179_s12 = smov (!%p210_p4, %s957_s12), 1 }
   0xf   : > { %s1023_s16 = sshll.u32 %s1179_s12, 3  ;;  %s863_s17 = smul.u32 56, %s1179_s12 }
  0x10   : > { %s221_s20 = scalar_lea.vmem %s1167_s1, %s1023_s16  ;;  %s235_s8 = scalar_lea.vmem %s1169_s3, %s1023_s16 }
  0x11   : > { %v1031_v4 = vld [vmem:[%s221_s20] sm:$0xff]  ;;  %s1036_s23 = scalar_lea.vmem %s1166_s0, %s863_s17  ;;  %s228_s11 = scalar_lea.vmem %s1168_s2, %s1023_s16 }
  0x12   : > { %249 = vrot.lane.b32.xlu1 %v1031_v4, %s972_s24  ;;  %329 = vrot.lane.b32.xlu0 %v1031_v4, %s973_s25  ;;  %v327_v5 = vld [vmem:[%s1036_s23 + $0x8] sm:$0xff]  ;;  %v328_v6 = vld [vmem:[%s1036_s23 + $0x10] sm:$0xff] }
  0x13   : > { %v525_v7 = vld [vmem:[%s1036_s23 + $0x18] sm:$0xff]  ;;  %v526_v8 = vld [vmem:[%s1036_s23 + $0x20] sm:$0xff]  ;;  %v855_v9 = vpack.c.bf16 %v328_v6, %v327_v5  ;;  %v1045_v12 = vld [vmem:[%s1036_s23 + $0x28] sm:$0xff] }
  0x14   : > { %v529_v10 = vand.u32 2147483647, %v525_v7  ;;  %v530_v11 = vand.u32 2147483647, %v526_v8  ;;  %v858_v13 = vpack.c.bf16 %v526_v8, %v525_v7  ;;  %v1048_v14 = vld [vmem:[%s1036_s23 + $0x30] sm:$0xff]  ;;  %v581_v34 = vmax.f32 %v525_v7, 0.0 }
  0x15   : > { %856 = vmatpush3.bf16.msra.mxu0 %v855_v9  ;;  %v861_v17 = vpack.c.bf16 %v1048_v14, %v1045_v12  ;;  %v582_v37 = vmax.f32 %v526_v8, 0.0  ;;  %v531_v52 = vand.u32 2147483647, %v1045_v12  ;;  %v532_v55 = vand.u32 2147483647, %v1048_v14 }
  0x16   : > { %598 = vrot.lane.b32.xlu0 %v1031_v4, %s974_s26  ;;  %v533_v15 = vsub.f32 0.0, %v529_v10  ;;  %v534_v16 = vsub.f32 0.0, %v530_v11  ;;  %859 = vmatpush3.bf16.msra.mxu1 %v858_v13  ;;  %v583_v13 = vmax.f32 %v1045_v12, 0.0 }
  0x17   : > { %860 = vmatprep.subr.bf16.mxu1 %v967_v0  ;;  %v535_v53 = vsub.f32 0.0, %v531_v52  ;;  %v536_v56 = vsub.f32 0.0, %v532_v55 }
  0x18   : > { %v537_v18 = vmul.f32 1.442695, %v533_v15  ;;  %v539_v19 = vmul.f32 1.442695, %v534_v16 }
  0x19   : > { %v541_v54 = vmul.f32 1.442695, %v535_v53  ;;  %v543_v57 = vmul.f32 1.442695, %v536_v56 }
  0x1a   : > { %244 = vrot.lane.b32.xlu0 %v1031_v4, %s975_s27  ;;  %917 = vpow2.f32 %v537_v18  ;;  %862 = vmatpush3.bf16.msra.mxu1 %v861_v17 }
  0x1b   : > { %919 = vpow2.f32 %v539_v19 }
  0x1e   : > { %449 = vrot.lane.b32.xlu0 %v1031_v4, %s976_s28 }
  0x22   : > { %258 = vperm.xlu0 %908, %v1031_v4  }
  0x24   : > { %v918_v20 = vpop.eup %917 }
  0x25   : > { %v920_v21 = vpop.eup %919  ;;  %v545_v22 = vadd.f32 1.0, %v918_v20  ;;  %v548_v25 = vmul.f32 -0.5, %v918_v20  ;;  %v551_v28 = vand.u32 2147483647, %v918_v20 }
  0x26   : > { %v554_v23 = vadd.f32 1.0, %v920_v21  ;;  %911 = vset.pattern.permute.xlu0 %v977_v24  ;;  %v557_v26 = vmul.f32 -0.5, %v920_v21  ;;  %v560_v30 = vand.u32 2147483647, %v920_v21 }
  0x27   : > { %921 = vlog2.f32 %v545_v22  ;;  %279 = vperm.xlu0 %911, %v1031_v4   ;;  %v549_v27 = vadd.f32 1.0, %v548_v25  ;;  %vm552_vm1 = vcmp.lt.f32.partialorder %v551_v28, 0.0004427343  ;;  %v584_v22 = vmax.f32 %v1048_v14, 0.0 }
  0x28   : > { %923 = vlog2.f32 %v554_v23  ;;  %v558_v29 = vadd.f32 1.0, %v557_v26  ;;  %vm561_vm2 = vcmp.lt.f32.partialorder %v560_v30, 0.0004427343 }
  0x29   : > { %v550_v31 = vmul.f32 %v918_v20, %v549_v27  ;;  %925 = vpow2.f32 %v541_v54 }
  0x2a   : > { %v559_v33 = vmul.f32 %v920_v21, %v558_v29  ;;  %927 = vpow2.f32 %v543_v57 }
  0x2b   : > { %914 = vset.pattern.permute.xlu0 %v971_v3 }
  0x31   : > { %v922_v32 = vpop.eup %921 }
  0x32   : > { %v924_v35 = vpop.eup %923  ;;  %v547_v36 = vmul.f32 0.6931472, %v922_v32 }
  0x33   : > { %v556_v38 = vmul.f32 0.6931472, %v924_v35  ;;  %v926_v58 = vpop.eup %925 }
  0x34   : > { %v553_v39 = vsel %vm552_vm1, %v550_v31, %v547_v36  ;;  %v563_v59 = vadd.f32 1.0, %v926_v58  ;;  %v928_v60 = vpop.eup %927  ;;  %v566_v61 = vmul.f32 -0.5, %v926_v58  ;;  %v569_v5 = vand.u32 2147483647, %v926_v58 }
  0x35   : > { %v562_v40 = vsel %vm561_vm2, %v559_v33, %v556_v38  ;;  %v585_v41 = vadd.f32 %v581_v34, %v553_v39  ;;  %v572_v62 = vadd.f32 1.0, %v928_v60  ;;  %v575_v17 = vmul.f32 -0.5, %v928_v60 }
  0x36   : > { %v586_v42 = vadd.f32 %v582_v37, %v562_v40  ;;  %929 = vlog2.f32 %v563_v59  ;;  %v567_v63 = vadd.f32 1.0, %v566_v61  ;;  %vm570_vm5 = vcmp.lt.f32.partialorder %v569_v5, 0.0004427343 }
  0x37   : > { %931 = vlog2.f32 %v572_v62  ;;  %v576_v20 = vadd.f32 1.0, %v575_v17  ;;  %v578_v23 = vand.u32 2147483647, %v928_v60  ;;  %v253_v38 = vlaneseq }
  0x38   : > { %v1059_v43 = vadd.f32 %v586_v42, %v585_v41  ;;  %v568_v8 = vmul.f32 %v926_v58, %v567_v63 }
  0x39   : > { %v577_v26 = vmul.f32 %v928_v60, %v576_v20  ;;  %vm579_vm6 = vcmp.lt.f32.partialorder %v578_v23, 0.0004427343  ;;  %v1084_v42 = vshrl.u32 %v253_v38, 7 }
  0x40   : > { %v930_v0 = vpop.eup %929 }
  0x41   : > { %v565_v7 = vmul.f32 0.6931472, %v930_v0  ;;  %v932_v21 = vpop.eup %931 }
  0x42   : > { %v574_v25 = vmul.f32 0.6931472, %v932_v21 }
  0x43   : > { %v571_v15 = vsel %vm570_vm5, %v568_v8, %v565_v7 }
  0x44   : > { %v580_v12 = vsel %vm579_vm6, %v577_v26, %v574_v25 }
  0x45   : > { %v588_v27 = vadd.f32 %v584_v22, %v580_v12 }
  0x84   : > { %v250_v44 = vpop.permute.xlu1 %249  ;;  %v330_v45 = vpop.permute.xlu0 %329 }
  0x85   : > { %v252_v46 = vsub.f32 %v1031_v4, %v250_v44  ;;  %841 = vmatmul.mubr.msk.f32.vlgmr.msra.gmra.mrb[0].mxu0 %vm331_vm3, %v330_v45 }
  0x87   : > { %484 = vrot.lane.b32.xlu1 %v252_v46, %s978_s29  ;;  %v284_v48 = vmul.f32 2.5, %v252_v46 }
  0x88   : > { %v599_v47 = vpop.permute.xlu0 %598 }
  0x89   : > { %852 = vmatmul.mubr.msk.f32.vlgmr.msra.gmra.mrb[0].mxu1 %vm600_vm4, %v599_v47  ;;  %v444_v47 = vsub.s32 2, %v1084_v42 }
  0x8b   : > { %286 = vrot.lane.b32.xlu1 %v284_v48, %s975_s27  ;;  %v270_v48 = vsub.s32 1, %v1084_v42 }
  0x8c   : > { %v245_v49 = vpop.permute.xlu0 %244 }
  0x8d   : > { %v247_v6 = vadd.f32 %v245_v49, %v1031_v4  ;;  %v237_v49 = vld [vmem:[%s1036_s23] sm:$0xf] }
  0x8e   : > { %v445_v54 = vrot.slane %v237_v49, %v444_v47  ;;  %v458_v56 = vrot.slane %v237_v49, %v270_v48 }
  0x8f   : > { %468 = vrot.lane.b32.xlu1 %v1031_v4, %s979_s30  ;;  %v248_v11 = vmul.f32 0.5, %v247_v6 }
  0x90   : > { %v450_v50 = vpop.permute.xlu0 %449 }
  0x91   : > { %864 = vpush %v450_v50 }
  0x93   : > { %263 = vperm.xlu1 %909, %v1031_v4  }
  0x97   : > { %910 = vset.pattern.permute.xlu1 %v980_v51 }
  0x98   : > { %273 = vperm.xlu1 %910, %v1031_v4   ;;  %v587_v4 = vadd.f32 %v583_v13, %v571_v15 }
  0x9a   : > { %v590_v28 = vadd.f32 %v1059_v43, %v587_v4  ;;  %v255_v43 = vsub.s32 0, %v1084_v42 }
  0x9c   : > { %912 = vset.pattern.permute.xlu1 %v970_v2  ;;  %v591_v14 = vadd.f32 %v590_v28, %v588_v27  ;;  %v439_v50 = vrot.slane %v237_v49, %v255_v43 }
  0x9e   : > { %v592_v29 = vrot.slane %v591_v14, 4 }
  0xa1   : > { %v1087_v44 = vpop.permute.xlu0 %258 }
  0xa2   : > { %v440_v59 = vsub.f32 %v439_v50, %v1087_v44  ;;  %v489_v60 = vmax.f32 %v439_v50, %v1087_v44 }
  0xa4   : > { %v441_v15 = vand.u32 2147483647, %v440_v59 }
  0xa6   : > { %v1099_v57 = vpop.permute.xlu0 %279 }
  0xc2   : > { %s1115_s4 = spop %864 }
  0xf9   : > { %v485_v9 = vpop.permute.xlu1 %484 }
  0xfa   : > { %v487_v10 = vmul.f32 %v485_v9, %v252_v46  ;;  %v463_v46 = vsub.s32 3, %v1084_v42  ;;  %v512_v9 = vmin.f32 %v439_v50, %v1087_v44 }
  0xfc   : > { %503 = vperm.xlu1 %912, %v487_v10   ;;  %v464_v53 = vrot.slane %v237_v49, %v463_v46 }
  0xfd   : > { %v287_v16 = vpop.permute.xlu1 %286 }
  0xfe   : > { %v289_v18 = vsub.f32 %v248_v11, %v287_v16  ;;  %v296_v19 = vadd.f32 %v287_v16, %v248_v11  ;;  %v465_v0 = vsub.f32 %v464_v53, %v1099_v57  ;;  %v492_v6 = vmin.f32 %v464_v53, %v1099_v57 }
  0xff   : > { %v514_v11 = vmax.f32 %v464_v53, %v1099_v57 }
 0x100   : > { %913 = vset.pattern.permute.xlu1 %v971_v3  ;;  %299 = vperm.xlu0 %914, %v296_v19   ;;  %v593_v3 = vadd.f32 %v592_v29, %v591_v14  ;;  %v466_v20 = vand.u32 2147483647, %v465_v0  ;;  %v452_v14 = vstv %s1115_s4 }
 0x101   : > { %292 = vperm.xlu1 %913, %v289_v18   ;;  %v469_v24 = vpop.permute.xlu1 %468 }
 0x102   : > { %866 = vpush %v469_v24  ;;  %v594_v30 = vrot.slane %v593_v3, 2 }
 0x104   : > { %916 = vset.pattern.permute.xlu0 %v970_v2  ;;  %v595_v31 = vadd.f32 %v594_v30, %v593_v3 }
 0x105   : > { %915 = vset.pattern.permute.xlu1 %v980_v51  ;;  %v476_v51 = vrot.slane %v237_v49, 6 }
 0x106   : > { %305 = vperm.xlu1 %915, %v289_v18   ;;  %v596_v32 = vrot.slane %v595_v31, 1  ;;  %v239_v18 = vrot.slane %v237_v49, 2 }
 0x107   : > { %v478_v61 = vsub.f32 %v237_v49, %v476_v51 }
 0x108   : > { %v1078_v36 = vadd.f32 %v596_v32, %v595_v31  ;;  %v241_v27 = vadd.f32 %v239_v18, %v237_v49 }
 0x109   : > { %v480_v16 = vrot.slane %v478_v61, 1 }
 0x10a   : > { %311 = vperm.xlu1 %915, %v296_v19   ;;  %v242_v51 = vmul.f32 0.5, %v241_v27 }
 0x10b   : > { %v482_v26 = vmul.f32 %v480_v16, %v478_v61 }
 0x10d   : > { %v500_v46 = vrot.slane %v482_v26, %v444_v47  ;;  %v256_v47 = vrot.slane %v242_v51, %v255_v43 }
 0x10f   : > { %vm261_vm10 = vcmp.gt.f32.partialorder %v256_v47, %v1087_v44 }
 0x112   : > { %v1089_v45 = vpop.permute.xlu1 %263 }
 0x113   : > { %v446_v63 = vsub.f32 %v445_v54, %v1089_v45  ;;  %v488_v8 = vmin.f32 %v445_v54, %v1089_v45  ;;  %v511_v13 = vmax.f32 %v445_v54, %v1089_v45  ;;  %vm266_vm9 = vcmp.lt.f32.partialorder %v256_v47, %v1089_v45 }
 0x114   : > { %vm267_vm11 = vmand %vm261_vm10, %vm266_vm9 }
 0x115   : > { %v447_v19 = vand.u32 2147483647, %v446_v63  ;;  %v490_v4 = vsub.f32 %v488_v8, %v489_v60  ;;  %v513_v25 = vsub.f32 %v511_v13, %v512_v9 }
 0x117   : > { %v1101_v58 = vpop.permute.xlu1 %273  ;;  %v448_v28 = vadd.f32 %v447_v19, %v441_v15  ;;  %v491_v30 = vmax.f32 %v490_v4, 0.0  ;;  %v271_v15 = vrot.slane %v242_v51, %v270_v48 }
 0x118   : > { %v493_v5 = vmax.f32 %v458_v56, %v1101_v58  ;;  %v459_v7 = vsub.f32 %v458_v56, %v1101_v58  ;;  %v515_v10 = vmin.f32 %v458_v56, %v1101_v58 }
 0x119   : > { %vm276_vm12 = vcmp.gt.f32.partialorder %v271_v15, %v1101_v58  ;;  %vm282_vm2 = vcmp.lt.f32.partialorder %v271_v15, %v1099_v57 }
 0x11a   : > { %v460_v22 = vand.u32 2147483647, %v459_v7  ;;  %v494_v23 = vsub.f32 %v492_v6, %v493_v5  ;;  %v516_v24 = vsub.f32 %v514_v11, %v515_v10  ;;  %vm277_vm0 = vmand %vm267_vm11, %vm276_vm12 }
 0x11b   : > { %vm1137_vm6 = vmand %vm277_vm0, %vm282_vm2 }
 0x11c   : > { %v467_v3 = vadd.f32 %v466_v20, %v460_v22  ;;  %v495_v31 = vmax.f32 %v494_v23, 0.0  ;;  %v517_v38 = vmul.f32 %v516_v24, %v513_v25 }
 0x11e   : > { %v496_v61 = vmul.f32 %v495_v31, %v491_v30  ;;  %v981_v30 = vmov 100.0  }
 0x133   : > { %s867_s5 = spop %866 }
 0x158   : > { %v1075_v33 = vpop.f32.mrb[0].mxu0 }
 0x159   : > { %v404_v34 = vand.u32 2147483647, %v1075_v33  ;;  %v842_v35 = vpop.f32.mrb[1].mxu0  ;;  %vm417_vm7 = vcmp.ge.f32.partialorder %v1075_v33, 0.0  ;;  %v425_v49 = vmax.f32 %v1075_v33, 0.0 }
 0x15b   : > { %v405_v37 = vsub.f32 0.0, %v404_v34 }
 0x15c   : > { %v1080_v2 = vpop.f32.mrb[0].mxu1 }
 0x15d   : > { %v406_v39 = vmul.f32 1.442695, %v405_v37  ;;  %v673_v40 = vsub.f32 %v1078_v36, %v1080_v2  ;;  %v853_v41 = vpop.f32.mrb[1].mxu1  ;;  %v422_v37 = vsub.f32 0.0, %v1075_v33  ;;  %v982_v36 = vmov 10000.0  }
 0x15e   : > { %v471_v41 = vstv %s867_s5 }
 0x15f   : > { %933 = vpow2.f32 %v406_v39  ;;  %v423_v56 = vmax.f32 %v422_v37, 0.0  ;;  %v473_v59 = vmul.f32 %v471_v41, %v467_v3 }
 0x169   : > { %v934_v52 = vpop.eup %933 }
 0x16a   : > { %v408_v55 = vadd.f32 1.0, %v934_v52  ;;  %v411_v62 = vmul.f32 -0.5, %v934_v52  ;;  %v414_v21 = vand.u32 2147483647, %v934_v52  ;;  %v418_v35 = vsel %vm417_vm7, 1.0, %v934_v52 }
 0x16c   : > { %935 = vlog2.f32 %v408_v55  ;;  %v412_v17 = vadd.f32 1.0, %v411_v62  ;;  %vm415_vm8 = vcmp.lt.f32.partialorder %v414_v21, 0.0004427343  ;;  %v518_v62 = vmax.f32 %v517_v38, 1e-06 }
 0x16d   : > { %937 = vrcp.f32 %v408_v55  ;;  %v454_v55 = vmul.f32 %v452_v14, %v448_v28  ;;  %v674_v28 = vmul.f32 0.03125, %v673_v40 }
 0x16e   : > { %v413_v12 = vmul.f32 %v934_v52, %v412_v17  ;;  %939 = vrcp.f32 %v518_v62 }
 0x16f   : > { %v474_v10 = vadd.f32 %v473_v59, %v454_v55 }
 0x171   : > { %v475_v43 = vmul.f32 5.0, %v474_v10 }
 0x176   : > { %v936_v29 = vpop.eup %935 }
 0x177   : > { %v938_v32 = vpop.eup %937  ;;  %v410_v34 = vmul.f32 0.6931472, %v936_v29 }
 0x178   : > { %v421_v39 = vmul.f32 %v938_v32, %v418_v35  ;;  %v940_v42 = vpop.eup %939 }
 0x179   : > { %v416_v50 = vsel %vm415_vm8, %v413_v12, %v410_v34 }
 0x17a   : > { %v427_v53 = vsub.f32 1.0, %v421_v39  ;;  %v431_v54 = vmul.f32 0.75, %v421_v39  ;;  %v426_v63 = vadd.f32 %v425_v49, %v416_v50  ;;  %v424_v6 = vadd.f32 %v423_v56, %v416_v50 }
 0x17b   : > { %v504_v60 = vpop.permute.xlu1 %503 }
 0x17c   : > { %v428_v52 = vmul.f32 0.25, %v427_v53  ;;  %v432_v0 = vmul.f32 %v431_v54, %v421_v39  ;;  %v506_v5 = vadd.f32 %v504_v60, %v500_v46 }
 0x17e   : > { %v429_v7 = vmul.f32 %v428_v52, %v427_v53  ;;  %v507_v8 = vsub.f32 %v506_v5, %v496_v61  ;;  %v433_v9 = vmul.f32 %v432_v0, %v426_v63 }
 0x17f   : > { %v300_v17 = vpop.permute.xlu0 %299 }
 0x180   : > { %v430_v33 = vmul.f32 %v429_v7, %v424_v6  ;;  %v508_v11 = vmax.f32 %v507_v8, 1e-06  ;;  %v293_v13 = vpop.permute.xlu1 %292  ;;  %vm302_vm13 = vcmp.lt.f32.partialorder %v256_v47, %v300_v17 }
 0x181   : > { %vm295_vm14 = vcmp.gt.f32.partialorder %v256_v47, %v293_v13 }
 0x182   : > { %v434_v16 = vsub.f32 %v430_v33, %v433_v9  ;;  %941 = vrcp.f32 %v508_v11  ;;  %v519_v48 = vsub.f32 %v518_v62, %v508_v11  ;;  %vm303_vm1 = vmand %vm295_vm14, %vm302_vm13 }
 0x184   : > { %v435_v18 = vmul.f32 2.0, %v434_v16  ;;  %v521_v4 = vmul.f32 %v940_v42, %v519_v48 }
 0x185   : > { %v306_v19 = vpop.permute.xlu1 %305 }
 0x186   : > { %v675_v20 = vadd.f32 %v475_v43, %v435_v18  ;;  %vm308_vm15 = vcmp.gt.f32.partialorder %v271_v15, %v306_v19 }
 0x187   : > { %vm309_vm3 = vmand %vm303_vm1, %vm308_vm15 }
 0x189   : > { %v312_v45 = vpop.permute.xlu1 %311 }
 0x18a   : > { %vm314_vm4 = vcmp.lt.f32.partialorder %v271_v15, %v312_v45 }
 0x18b   : > { %vm1129_vm5 = vmand %vm309_vm3, %vm314_vm4 }
 0x18c   : > { %v942_v21 = vpop.eup %941  ;;  %vm317_vm7 = vmor %vm1137_vm6, %vm1129_vm5 }
 0x18d   : > { %v510_v22 = vmul.f32 %v942_v21, %v496_v61  ;;  %v823_v57 = vsel %vm317_vm7, 1.0, %v969_v1  ;;  %vm316_vm8 = vmand %vm1137_vm6, %vm1129_vm5 }
 0x18e   : > { %v320_v23 = vrot.slane %v823_v57, 4  ;;  %v678_v31 = vsel %vm316_vm8, 0.0, %v981_v30 }
 0x18f   : > { %683 = vst [vmem:[%s235_s8] sm:$0xff] %v510_v22  ;;  %v522_v24 = vsub.f32 %v510_v22, %v521_v4 }
 0x190   : > { %v321_v25 = vmax.f32 %v823_v57, %v320_v23 }
 0x191   : > { %v523_v26 = vsub.f32 0.0, %v522_v24 }
 0x192   : > { %v322_v12 = vrot.slane %v321_v25, 2 }
 0x193   : > { %v524_v27 = vmul.f32 2.0, %v523_v26 }
 0x194   : > { %v323_v14 = vmax.f32 %v321_v25, %v322_v12 }
 0x195   : > { %v676_v29 = vadd.f32 %v675_v20, %v524_v27 }
 0x196   : > { %v324_v1 = vrot.slane %v323_v14, 1 }
 0x197   : > { %v677_v3 = vadd.f32 %v676_v29, %v674_v28 }
 0x198   : > { %v325_v32 = vmax.f32 %v323_v14, %v324_v1 }
 0x199   : > { %v679_v34 = vadd.f32 %v678_v31, %v677_v3 }
 0x19a   : > { %vm326_vm9 = vcmp.gt.f32.partialorder %v325_v32, 0.0 }
 0x19b   : > { %v680_v2 = vsel %vm326_vm9, 0.0, %v982_v36 }
 0x19c   : > { %v681_v40 = vadd.f32 %v680_v2, %v679_v34 }
 0x19e   : > { %682 = vst [vmem:[%s228_s11] sm:$0xff] %v681_v40 }
 0x19f PF: > { %s14_s14 = sadd.s32 1, %s965_s14   ;;  %s1174_s12 = smov %s961_s13 }
 0x1a0   : > { %p11_p5 = scmp.ge.s32.totalorder %s14_s14, 4   ;;  %s1175_s13 = smov %s1177_s15 }
 0x1a2   :  { %13 = sbr.rel (!%p11_p5) target bundleno = 2 (0x2), region = 73 }

</bundles_post_ra>
